<compile_context>
chip_gen: v7x
topology: tpu7x:2x2x1
jax: 0.10.0
libtpu: 0.0.40
codegen_flags: <defaults>
</compile_context>

<pallas_src>
import jax
import jax.numpy as jnp
from jax.experimental import pallas as pl
from jax.experimental.pallas import tpu as pltpu


_LANE = 128      # vreg lane width
_SUBLANE = 8     # vreg sublane count (f32)


def _round_up(x, m):
    return (x + m - 1) // m * m


# --------------------------------------------------------------------------
# Kernel: one batch tile of  relu(x @ W1 + b1) @ W2 + b2
# --------------------------------------------------------------------------
def qnet_kernel(x_ref, w1_ref, b1_ref, w2_ref, b2_ref, o_ref):
    # fc1: bf16 MXU matmul, f32 accumulate; bias add + ReLU on f32 (VPU).
    h = jnp.dot(x_ref[...], w1_ref[...], preferred_element_type=jnp.float32)
    h = jnp.maximum(h + b1_ref[...], 0.0)
    # fc2: downcast activations to bf16 for the MXU, accumulate in f32.
    q = jnp.dot(h.astype(w2_ref.dtype), w2_ref[...],
                preferred_element_type=jnp.float32)
    q = q + b2_ref[...]
    # Store only the real action columns (narrow masked vst; overhead-bound
    # kernel, so the 64x smaller writeback wins over unmasked full-lane vst).
    o_ref[...] = q[:, :o_ref.shape[1]].astype(o_ref.dtype)


# --------------------------------------------------------------------------
# Parameter packing: pad weights to lane-dense shapes (bf16 for the MXU),
# keep biases in f32 (added in-kernel), keep raw f32 params for the XLA path.
# --------------------------------------------------------------------------
def pack_qnet_params(w1, b1, w2, b2, dtype=jnp.bfloat16):
    """w1: (S, H), b1: (H,)/(1,H), w2: (H, A), b2: (A,)/(1,A)."""
    S, H = w1.shape
    _, A = w2.shape
    S_pad = _round_up(S, _LANE)
    H_pad = _round_up(H, _LANE)
    A_pad = _round_up(A, _LANE)

    w1_p = jnp.zeros((S_pad, H_pad), jnp.float32).at[:S, :H].set(
        w1.astype(jnp.float32)).astype(dtype)
    w2_p = jnp.zeros((H_pad, A_pad), jnp.float32).at[:H, :A].set(
        w2.astype(jnp.float32)).astype(dtype)
    b1_p = jnp.zeros((1, H_pad), jnp.float32).at[0, :H].set(
        jnp.reshape(b1, (-1,)).astype(jnp.float32))
    b2_p = jnp.zeros((1, A_pad), jnp.float32).at[0, :A].set(
        jnp.reshape(b2, (-1,)).astype(jnp.float32))

    return {
        "w1_p": w1_p, "b1_p": b1_p, "w2_p": w2_p, "b2_p": b2_p,
        # raw f32 params for the tiny-batch XLA path
        "w1": w1.astype(jnp.float32), "b1": jnp.reshape(b1, (1, -1)).astype(jnp.float32),
        "w2": w2.astype(jnp.float32), "b2": jnp.reshape(b2, (1, -1)).astype(jnp.float32),
        "state_dim": S, "hidden_dim": H, "action_dim": A,
    }


# --------------------------------------------------------------------------
# Batch tiling: at most 2 grid steps while the tile fits comfortably in VMEM.
#   - 1 step for small batches (no serial-loop overhead on v5e/v6e),
#   - 2 steps once B_pad >= 512 (feeds both TensorCores on v7x),
#   - cap the tile at max_tile for very large batches.
# --------------------------------------------------------------------------
def _choose_batch_tile(B, max_tile=2048):
    B_pad = _round_up(B, 2 * _SUBLANE)          # multiple of 16 so B_pad//2 is 8-aligned
    if B_pad <= max_tile:
        tb = B_pad // 2 if B_pad >= 512 else B_pad
    else:
        tb = max_tile
        B_pad = _round_up(B_pad, tb)
    return B_pad, tb


# --------------------------------------------------------------------------
# Pallas forward: pad batch once, run 1-2 grid steps, trim padded rows.
# --------------------------------------------------------------------------
def qnet_forward(x, packed, *, max_tile=2048, out_dtype=jnp.float32):
    """x: (B, state_dim) -> (B, action_dim) Q-values via the Pallas kernel."""
    w1_p, b1_p = packed["w1_p"], packed["b1_p"]
    w2_p, b2_p = packed["w2_p"], packed["b2_p"]
    S, H, A = packed["state_dim"], packed["hidden_dim"], packed["action_dim"]

    B = x.shape[0]
    S_pad, H_pad = w1_p.shape
    A_pad = w2_p.shape[1]
    B_pad, tb = _choose_batch_tile(B, max_tile)

    # Single padding op on the bf16 input (padded columns hit zero weight rows).
    x_p = jnp.pad(x.astype(w1_p.dtype), ((0, B_pad - B), (0, S_pad - S)))

    # Advisory cost estimate with REAL (unpadded) dims.
    flops = 2 * B * (S * H + H * A)
    bytes_accessed = (B * S * x_p.dtype.itemsize
                      + w1_p.size * w1_p.dtype.itemsize
                      + w2_p.size * w2_p.dtype.itemsize
                      + b1_p.size * 4 + b2_p.size * 4
                      + B * A * jnp.dtype(out_dtype).itemsize)

    q_pad = pl.pallas_call(
        qnet_kernel,
        out_shape=jax.ShapeDtypeStruct((B_pad, A), out_dtype),
        grid=(B_pad // tb,),
        in_specs=[
            pl.BlockSpec((tb, S_pad), lambda i: (i, 0)),      # batch-tiled input
            pl.BlockSpec((S_pad, H_pad), lambda i: (0, 0)),   # W1 resident in VMEM
            pl.BlockSpec((1, H_pad), lambda i: (0, 0)),       # b1 (f32) resident
            pl.BlockSpec((H_pad, A_pad), lambda i: (0, 0)),   # W2 resident
            pl.BlockSpec((1, A_pad), lambda i: (0, 0)),       # b2 (f32) resident
        ],
        out_specs=pl.BlockSpec((tb, A), lambda i: (i, 0)),    # narrow (real-action) store
        compiler_params=pltpu.CompilerParams(
            dimension_semantics=("parallel",),                # megacore shard on v7x
        ),
        cost_estimate=pl.CostEstimate(
            flops=flops, transcendentals=0, bytes_accessed=bytes_accessed),
    )(x_p, w1_p, b1_p, w2_p, b2_p)

    return q_pad[:B]


# --------------------------------------------------------------------------
# Dispatcher: tiny per-env-step batches go through plain XLA (it fuses a
# 4x32x2 MLP into one trivial kernel); the Pallas kernel handles rollout /
# training batches.
# --------------------------------------------------------------------------
def qnet_apply(x, packed, *, small_batch_threshold=16):
    if x.shape[0] < small_batch_threshold:
        h = jnp.maximum(x.astype(jnp.float32) @ packed["w1"] + packed["b1"], 0.0)
        return h @ packed["w2"] + packed["b2"]
    return qnet_forward(x, packed)


# --------------------------------------------------------------------------
# Init + pure-JAX reference (torch.nn.Linear default init semantics).
# --------------------------------------------------------------------------
def init_qnet_params(key, state_dim, hidden_dim, action_dim, dtype=jnp.float32):
    k1, k2, k3, k4 = jax.random.split(key, 4)
    bound1 = 1.0 / jnp.sqrt(state_dim)
    bound2 = 1.0 / jnp.sqrt(hidden_dim)
    w1 = jax.random.uniform(k1, (state_dim, hidden_dim), dtype, -bound1, bound1)
    b1 = jax.random.uniform(k2, (1, hidden_dim), dtype, -bound1, bound1)
    w2 = jax.random.uniform(k3, (hidden_dim, action_dim), dtype, -bound2, bound2)
    b2 = jax.random.uniform(k4, (1, action_dim), dtype, -bound2, bound2)
    return w1, b1, w2, b2


def qnet_reference(x, w1, b1, w2, b2):
    h = jnp.maximum(x @ w1 + b1, 0.0)
    return h @ w2 + b2


if __name__ == "__main__":
    batch = 2
    state_dim = 4
    hidden_dim = 32
    action_dim = 2

    key = jax.random.PRNGKey(0)
    kx, kp, kb = jax.random.split(key, 3)
    x = jax.random.normal(kx, (batch, state_dim), jnp.float32)
    w1, b1, w2, b2 = init_qnet_params(kp, state_dim, hidden_dim, action_dim)

    # One-time packing (pad + bf16 weights; f32 biases stay exact).
    packed = pack_qnet_params(w1, b1, w2, b2)

    # Small batch through the Pallas kernel directly (single grid step).
    out = qnet_forward(x, packed)
    out = jax.block_until_ready(out)
    ref = qnet_reference(x, w1, b1, w2, b2)
    assert out.shape == (batch, action_dim)
    assert jnp.allclose(out, ref, atol=2e-2, rtol=2e-2), (
        float(jnp.max(jnp.abs(out - ref))))

    # Rollout/training-sized batch: 2 grid steps of 512 rows (feeds both
    # TensorCores on v7x; still only 2 serial steps on v5e/v6e).
    big_batch = 1024
    xb = jax.random.normal(kb, (big_batch, state_dim), jnp.float32)
    outb = qnet_forward(xb, packed)
    outb = jax.block_until_ready(outb)
    refb = qnet_reference(xb, w1, b1, w2, b2)
    assert outb.shape == (big_batch, action_dim)
    assert jnp.allclose(outb, refb, atol=2e-2, rtol=2e-2), (
        float(jnp.max(jnp.abs(outb - refb))))

    # Dispatcher: tiny action-selection batch goes through plain XLA (exact f32).
    out_small = jax.block_until_ready(qnet_apply(x, packed))
    assert jnp.allclose(out_small, ref, atol=1e-5, rtol=1e-5)

    print("KERNEL_OK")
</pallas_src>

<mosaic_0001>
module attributes {stable_mosaic.version = 11 : i64} {
  func.func @qnet_kernel(%arg0: i32, %arg1: memref<16x128xbf16, #tpu.memory_space<vmem>>, %arg2: memref<128x128xbf16, #tpu.memory_space<vmem>>, %arg3: memref<1x128xf32, #tpu.memory_space<vmem>>, %arg4: memref<128x128xbf16, #tpu.memory_space<vmem>>, %arg5: memref<1x128xf32, #tpu.memory_space<vmem>>, %arg6: memref<16x2xf32, #tpu.memory_space<vmem>>) attributes {dimension_semantics = [#tpu.dimension_semantics<parallel>], iteration_bounds = array<i64: 1>, scalar_prefetch = 0 : i64, scratch_operands = 0 : i64, tpu.core_type = #tpu.core_type<tc>, window_params = [{transform_indices = @transform_0, window_bounds = array<i64: 16, 128>}, {pipeline_mode = #tpu.pipeline_mode<synchronous>, transform_indices = @transform_1, window_bounds = array<i64: 128, 128>}, {pipeline_mode = #tpu.pipeline_mode<synchronous>, transform_indices = @transform_2, window_bounds = array<i64: 1, 128>}, {pipeline_mode = #tpu.pipeline_mode<synchronous>, transform_indices = @transform_3, window_bounds = array<i64: 128, 128>}, {pipeline_mode = #tpu.pipeline_mode<synchronous>, transform_indices = @transform_4, window_bounds = array<i64: 1, 128>}, {transform_indices = @transform_5, window_bounds = array<i64: 16, 2>}]} {
    %c0 = arith.constant 0 : index
    %c0_0 = arith.constant 0 : index
    %0 = vector.load %arg1[%c0, %c0_0] : memref<16x128xbf16, #tpu.memory_space<vmem>>, vector<16x128xbf16>
    %c0_1 = arith.constant 0 : index
    %c0_2 = arith.constant 0 : index
    %1 = vector.load %arg2[%c0_1, %c0_2] : memref<128x128xbf16, #tpu.memory_space<vmem>>, vector<128x128xbf16>
    %cst = arith.constant dense<0.000000e+00> : vector<16x128xf32>
    %2 = tpu.matmul %0, %1, %cst {dimension_numbers = #tpu.dot_dimension_numbers<[1], [0], [0], [1], [0, 0, 1, 1], [], []>} : vector<16x128xbf16>, vector<128x128xbf16>, vector<16x128xf32> -> vector<16x128xf32>
    %c0_3 = arith.constant 0 : index
    %c0_4 = arith.constant 0 : index
    %3 = vector.load %arg3[%c0_3, %c0_4] : memref<1x128xf32, #tpu.memory_space<vmem>>, vector<1x128xf32>
    %4 = vector.broadcast %3 : vector<1x128xf32> to vector<16x128xf32>
    %5 = arith.addf %2, %4 : vector<16x128xf32>
    %cst_5 = arith.constant 0.000000e+00 : f32
    %6 = vector.broadcast %cst_5 : f32 to vector<16x128xf32>
    %7 = arith.maximumf %5, %6 : vector<16x128xf32>
    %8 = arith.truncf %7 : vector<16x128xf32> to vector<16x128xbf16>
    %c0_6 = arith.constant 0 : index
    %c0_7 = arith.constant 0 : index
    %9 = vector.load %arg4[%c0_6, %c0_7] : memref<128x128xbf16, #tpu.memory_space<vmem>>, vector<128x128xbf16>
    %cst_8 = arith.constant dense<0.000000e+00> : vector<16x128xf32>
    %10 = tpu.matmul %8, %9, %cst_8 {dimension_numbers = #tpu.dot_dimension_numbers<[1], [0], [0], [1], [0, 0, 1, 1], [], []>} : vector<16x128xbf16>, vector<128x128xbf16>, vector<16x128xf32> -> vector<16x128xf32>
    %c0_9 = arith.constant 0 : index
    %c0_10 = arith.constant 0 : index
    %11 = vector.load %arg5[%c0_9, %c0_10] : memref<1x128xf32, #tpu.memory_space<vmem>>, vector<1x128xf32>
    %12 = vector.broadcast %11 : vector<1x128xf32> to vector<16x128xf32>
    %13 = arith.addf %10, %12 : vector<16x128xf32>
    %14 = vector.extract_strided_slice %13 {offsets = [0, 0], sizes = [16, 2], strides = [1, 1]} : vector<16x128xf32> to vector<16x2xf32>
    %c0_11 = arith.constant 0 : index
    %c0_12 = arith.constant 0 : index
    %15 = vector.load %arg6[%c0_11, %c0_12] : memref<16x2xf32, #tpu.memory_space<vmem>>, vector<16x2xf32>
    tpu.vector_store %arg6[%c0_11, %c0_12], %14 {strides = array<i32>} : memref<16x2xf32, #tpu.memory_space<vmem>>, vector<16x2xf32>,
    return
  }
  func.func @transform_0(%arg0: i32) -> (i32, i32) {
    %c0_i32 = arith.constant 0 : i32
    %c0_i32_0 = arith.constant 0 : i32
    return %arg0, %c0_i32 : i32, i32
  }
  func.func @transform_1(%arg0: i32) -> (i32, i32) {
    %c0_i32 = arith.constant 0 : i32
    %c0_i32_0 = arith.constant 0 : i32
    %c0_i32_1 = arith.constant 0 : i32
    return %c0_i32, %c0_i32_0 : i32, i32
  }
  func.func @transform_2(%arg0: i32) -> (i32, i32) {
    %c0_i32 = arith.constant 0 : i32
    %c0_i32_0 = arith.constant 0 : i32
    %c0_i32_1 = arith.constant 0 : i32
    return %c0_i32, %c0_i32_0 : i32, i32
  }
  func.func @transform_3(%arg0: i32) -> (i32, i32) {
    %c0_i32 = arith.constant 0 : i32
    %c0_i32_0 = arith.constant 0 : i32
    %c0_i32_1 = arith.constant 0 : i32
    return %c0_i32, %c0_i32_0 : i32, i32
  }
  func.func @transform_4(%arg0: i32) -> (i32, i32) {
    %c0_i32 = arith.constant 0 : i32
    %c0_i32_0 = arith.constant 0 : i32
    %c0_i32_1 = arith.constant 0 : i32
    return %c0_i32, %c0_i32_0 : i32, i32
  }
  func.func @transform_5(%arg0: i32) -> (i32, i32) {
    %c0_i32 = arith.constant 0 : i32
    %c0_i32_0 = arith.constant 0 : i32
    return %arg0, %c0_i32 : i32, i32
  }
}

</mosaic_0001>

<bundles_post_ra>
// kernel: tpu_custom_call.1
= control target key start
LH: loop header
LB: loop body
LE: loop exit
PB: predicated region body
PF: predicated region fallthrough
CT: control target
= control target key end

     0   :  { %10 = vsyncpa [#allocation3], 0  ;;  %s578_s0 = inlined_call_operand.hbm [shape: bf16[16,128], index: 0, kind: input, shape index: {}]   ;;  %s579_s1 = inlined_call_operand.hbm [shape: bf16[128,128], index: 1, kind: input, shape index: {}]   ;;  %s580_s2 = inlined_call_operand.vmem [shape: f32[1,128], index: 2, kind: input, shape index: {}]   ;;  %s581_s3 = inlined_call_operand.hbm [shape: bf16[128,128], index: 3, kind: input, shape index: {}]   ;;  %s582_s4 = inlined_call_operand.vmem [shape: f32[1,128], index: 4, kind: input, shape index: {}]   ;;  %s583_s5 = inlined_call_operand.vmem [shape: f32[16,2], index: 5, kind: output, shape index: {}]  }
   0x1   :  { %11 = vsyncpa [#allocation5], 0  ;;  %s477_s18 = smov [#allocation4]   ;;  %s478_s20 = smov [#allocation2]  }
   0x2   :  { %s29_s19 = sshll.u32 %s477_s18, 4  ;;  %s17_s21 = sshll.u32 %s478_s20, 4  ;;  %s30_s19 = int_to_ptr.vmem [resolvable:$true] %s29_s19  ;;  %s514_s21 = int_to_ptr.vmem [resolvable:$true] %s17_s21 }
   0x3   :  { %s407_s24 = scalar_lea.hbm %s579_s1, 1024 }
   0x4   :  { %p408_p0 = scmp.ne.s32.totalorder %s579_s1, %s407_s24  ;;  %p411_p1 = scmp.lt.u32.totalorder %s407_s24, %s579_s1 }
   0x6   :  { %p413_p2 = pnand %p411_p1, %p408_p0 }
   0x8   :  { %416 = shalt.err (!%p413_p2)
}
   0x9   :  { %s417_s29 = scalar_lea.vmem %s30_s19, 1024  ;;  %p422_p4 = scmp.lt.s32.totalorder %s30_s19, %s30_s19 }
   0xa   :  { %p418_p3 = scmp.ne.s32.totalorder %s30_s19, %s417_s29  ;;  %p423_p5 = scmp.lt.s32.totalorder %s417_s29, %s417_s29 }
   0xc   :  { %p424_p6 = por %p423_p5, %p422_p4 }
   0xe   :  { %p425_p7 = pnand %p424_p6, %p418_p3 }
  0x10   :  { %428 = shalt.err (!%p425_p7)
}
  0x11   :  { %s479_s30 = smov 64   ;;  %s480_s6 = smov 4  }
  0x12   :  { %35 = dma.hbm_to_vmem [thread:$0]  %s579_s1, 1024, %s30_s19, [#allocation5], %s479_s30, %s479_s30, %s480_s6  }
  0x13   :  { %s429_s11 = scalar_lea.hbm %s578_s0, 128 }
  0x14   :  { %p430_p8 = scmp.ne.s32.totalorder %s578_s0, %s429_s11  ;;  %p433_p9 = scmp.lt.u32.totalorder %s429_s11, %s578_s0 }
  0x16   :  { %p435_p10 = pnand %p433_p9, %p430_p8 }
  0x18   :  { %438 = shalt.err (!%p435_p10)
}
  0x19   :  { %s439_s16 = scalar_lea.vmem %s514_s21, 128  ;;  %p444_p12 = scmp.lt.s32.totalorder %s514_s21, %s514_s21 }
  0x1a   :  { %p440_p11 = scmp.ne.s32.totalorder %s514_s21, %s439_s16  ;;  %p445_p13 = scmp.lt.s32.totalorder %s439_s16, %s439_s16 }
  0x1c   :  { %p446_p0 = por %p445_p13, %p444_p12 }
  0x1e   :  { %p447_p1 = pnand %p446_p0, %p440_p11 }
  0x20   :  { %450 = shalt.err (!%p447_p1)
}
  0x21   :  { %23 = dma.hbm_to_vmem [thread:$0]  %s578_s0, 128, %s514_s21, [#allocation3], %s479_s30, %s479_s30, %s480_s6  }
  0x22   :  { %s481_s18 = smov [#allocation6]   ;;  %s451_s23 = scalar_lea.hbm %s581_s3, 1024 }
  0x23   :  { %s43_s19 = sshll.u32 %s481_s18, 4  ;;  %p452_p2 = scmp.ne.s32.totalorder %s581_s3, %s451_s23  ;;  %s44_s19 = int_to_ptr.vmem [resolvable:$true] %s43_s19 }
  0x24   :  { %p455_p3 = scmp.lt.u32.totalorder %s451_s23, %s581_s3 }
  0x26   :  { %p457_p4 = pnand %p455_p3, %p452_p2 }
  0x28   :  { %460 = shalt.err (!%p457_p4)
}
  0x29   :  { %s461_s28 = scalar_lea.vmem %s44_s19, 1024  ;;  %p466_p6 = scmp.lt.s32.totalorder %s44_s19, %s44_s19 }
  0x2a   :  { %p462_p5 = scmp.ne.s32.totalorder %s44_s19, %s461_s28  ;;  %p467_p7 = scmp.lt.s32.totalorder %s461_s28, %s461_s28 }
  0x2c   :  { %p468_p8 = por %p467_p7, %p466_p6 }
  0x2e   :  { %p469_p9 = pnand %p468_p8, %p462_p5 }
  0x30   :  { %472 = shalt.err (!%p469_p9)
}
  0x31   :  { %49 = dma.hbm_to_vmem [thread:$0]  %s581_s3, 1024, %s44_s19, [#allocation5], %s479_s30, %s479_s30, %s480_s6  }
  0x32   :  { %473 = dma.done.wait [#allocation3], 128  }
  0x33   :  { %474 = vsyncadd [#allocation3], 4294967168 }
  0x34   :  { %475 = dma.done.wait [#allocation5], 2048  }
  0x35   :  { %476 = vsyncadd [#allocation5], 4294965248  ;;  %v482_v0 = vmov 0.0   ;;  %vm483_vm0 = vmmov 0   ;;  %v390_v1 = vld [vmem:[#allocation4] sm:$0xff]   ;;  %v391_v2 = vld [vmem:[#allocation4 + $0x8] sm:$0xff]  }
  0x36   :  { %343 = vmatprep.subr.bf16.mxu0 %v482_v0  ;;  %359 = vmatprep.mubr.msk.bf16.mxu0 %vm483_vm0, %v482_v0  ;;  %v392_v3 = vld [vmem:[#allocation4 + $0x10] sm:$0xff]   ;;  %v399_v4 = vld [vmem:[#allocation6] sm:$0xff]   ;;  %v393_v5 = vld [vmem:[#allocation4 + $0x18] sm:$0xff]   ;;  %vm297_vm1 = vcmask 15360  }
  0x37   :  { %363 = vmatprep.subr.bf16.mxu1 %v482_v0  ;;  %379 = vmatprep.mubr.msk.bf16.mxu1 %vm483_vm0, %v482_v0  ;;  %v400_v6 = vld [vmem:[#allocation6 + $0x8] sm:$0xff]   ;;  %v394_v7 = vld [vmem:[#allocation4 + $0x20] sm:$0xff]   ;;  %v401_v8 = vld [vmem:[#allocation6 + $0x10] sm:$0xff]  }
  0x38   :  { %344 = vmatpush3.bf16.msra.mxu0 %v390_v1  ;;  %364 = vmatpush3.bf16.msra.mxu1 %v399_v4  ;;  %v395_v9 = vld [vmem:[#allocation4 + $0x28] sm:$0xff]   ;;  %v402_v10 = vld [vmem:[#allocation6 + $0x18] sm:$0xff]   ;;  %v396_v11 = vld [vmem:[#allocation4 + $0x30] sm:$0xff]  }
  0x39   :  { %345 = vmatprep.subr.bf16.mxu0 %v482_v0  ;;  %365 = vmatprep.subr.bf16.mxu1 %v482_v0  ;;  %v403_v12 = vld [vmem:[#allocation6 + $0x20] sm:$0xff]   ;;  %v397_v13 = vld [vmem:[#allocation4 + $0x38] sm:$0xff]   ;;  %v404_v14 = vld [vmem:[#allocation6 + $0x28] sm:$0xff]  }
  0x3a   :  { %v398_v15 = vld [vmem:[#allocation2] sm:$0xff]   ;;  %v405_v16 = vld [vmem:[#allocation6 + $0x30] sm:$0xff]  }
  0x3b   :  { %v406_v17 = vld [vmem:[#allocation6 + $0x38] sm:$0xff]  }
  0x3c   :  { %346 = vmatpush3.bf16.msra.mxu0 %v391_v2  ;;  %366 = vmatpush3.bf16.msra.mxu1 %v400_v6  ;;  %v306_v18 = vld [vmem:[%s580_s2] ss:$0 sm:$0xff] }
  0x3d   :  { %347 = vmatprep.subr.bf16.mxu0 %v482_v0  ;;  %367 = vmatprep.subr.bf16.mxu1 %v482_v0  ;;  %v316_v28 = vld [vmem:[%s582_s4] ss:$0 sm:$0xff] }
  0x40   :  { %348 = vmatpush3.bf16.msra.mxu0 %v392_v3  ;;  %368 = vmatpush3.bf16.msra.mxu1 %v401_v8 }
  0x41   :  { %349 = vmatprep.subr.bf16.mxu0 %v482_v0  ;;  %369 = vmatprep.subr.bf16.mxu1 %v482_v0 }
  0x44   :  { %350 = vmatpush3.bf16.msra.mxu0 %v393_v5  ;;  %370 = vmatpush3.bf16.msra.mxu1 %v402_v10 }
  0x45   :  { %351 = vmatprep.subr.bf16.mxu0 %v482_v0  ;;  %371 = vmatprep.subr.bf16.mxu1 %v482_v0 }
  0x48   :  { %352 = vmatpush3.bf16.msra.mxu0 %v394_v7  ;;  %372 = vmatpush3.bf16.msra.mxu1 %v403_v12 }
  0x49   :  { %353 = vmatprep.subr.bf16.mxu0 %v482_v0  ;;  %373 = vmatprep.subr.bf16.mxu1 %v482_v0 }
  0x4c   :  { %354 = vmatpush3.bf16.msra.mxu0 %v395_v9  ;;  %374 = vmatpush3.bf16.msra.mxu1 %v404_v14 }
  0x4d   :  { %355 = vmatprep.subr.bf16.mxu0 %v482_v0  ;;  %375 = vmatprep.subr.bf16.mxu1 %v482_v0 }
  0x50   :  { %356 = vmatpush3.bf16.msra.mxu0 %v396_v11  ;;  %376 = vmatpush3.bf16.msra.mxu1 %v405_v16 }
  0x51   :  { %357 = vmatprep.subr.bf16.mxu0 %v482_v0  ;;  %377 = vmatprep.subr.bf16.mxu1 %v482_v0 }
  0x54   :  { %358 = vmatpush3.bf16.msra.mxu0 %v397_v13  ;;  %378 = vmatpush3.bf16.msra.mxu1 %v406_v17 }
  0x57   :  { %360 = vmatmul.mubr.bf16.vlgmr.msra.gmra.mrb[0].mxu0 %v398_v15 }
 0x12a   :  { %v175_v19 = vpop.f32.mrb[0].mxu0 }
 0x12b   :  { %v176_v20 = vadd.f32 %v306_v18, %v175_v19  ;;  %v361_v21 = vpop.f32.mrb[1].mxu0 }
 0x12c   :  { %v178_v22 = vpop.f32.mrb[2].mxu0 }
 0x12d   :  { %v179_v23 = vadd.f32 %v306_v18, %v178_v22  ;;  %v362_v24 = vpop.f32.mrb[3].mxu0  ;;  %v182_v25 = vmax.f32 %v176_v20, 0.0 }
 0x12f   :  { %v183_v26 = vmax.f32 %v179_v23, 0.0 }
 0x131   :  { %v184_v27 = vpack.c.bf16 %v183_v26, %v182_v25 }
 0x133   :  { %380 = vmatmul.mubr.bf16.vlgmr.msra.gmra.mrb[0].mxu1 %v184_v27 }
 0x206   :  { %v290_v29 = vpop.f32.mrb[0].mxu1 }
 0x207   :  { %v291_v30 = vadd.f32 %v316_v28, %v290_v29  ;;  %v381_v31 = vpop.f32.mrb[1].mxu1 }
 0x208   :  { %v293_v32 = vpop.f32.mrb[2].mxu1 }
 0x209   :  { %298 = vst.msk [vmem:[%s583_s5] sm:$0xff] %vm297_vm1, %v291_v30  ;;  %v294_v33 = vadd.f32 %v316_v28, %v293_v32  ;;  %v382_v34 = vpop.f32.mrb[3].mxu1 }
 0x20b   :  { %299 = vst.msk [vmem:[%s583_s5 + $0x8] sm:$0xff] %vm297_vm1, %v294_v33 }
 0x20c   :  { %304 = vsyncpa [#allocation3], 1 }
 0x20d   :  { %305 = vsyncpa [#allocation5], 1 }

</bundles_post_ra>
